<compile_context>
chip_gen: v7x
topology: tpu7x:2x2x1
jax: 0.10.0
libtpu: 0.0.40
codegen_flags: <defaults>
</compile_context>

<pallas_src>
import functools

import jax
import jax.numpy as jnp
from jax.experimental import pallas as pl
from jax.experimental.pallas import tpu as pltpu

_LANE = 128


def _round_up(n, m):
    return ((n + m - 1) // m) * m


def _cdiv(a, b):
    return (a + b - 1) // b


def _elementwise_dtype_for_backend():
    """bf16 bias-add/ReLU on v6e/v7x (bf16 VPU path); f32 on v5e and unknown."""
    try:
        kind = jax.devices()[0].device_kind.lower()
    except Exception:
        return jnp.float32
    return jnp.bfloat16 if ("v6" in kind or "v7" in kind) else jnp.float32


def _choose_block_b(B, block_b):
    """Balanced batch tiles.

    * never "clamp then round up" (old rule padded B=520 to 1024); instead pick
      n_tiles = cdiv(B, block_b) and balance rows across tiles.
    * force >= 2 tiles once B >= 512 so v7x's 2 TensorCores both get work on
      the "parallel" batch axis (near-2x there; ~0.35us extra on 1-TC chips).
    * align to 16 rows (bf16 packs 2 rows/sublane); widen to 128/256 (MXU row
      groups) only when the extra padding stays under ~12.5% of the batch.
    """
    n_tiles = max(1, _cdiv(B, block_b))
    if n_tiles == 1 and B >= 512:
        n_tiles = 2
    bb = _cdiv(B, n_tiles)
    for align in (256, 128):
        cand = _round_up(bb, align)
        if n_tiles * cand - B <= B // 8:
            return cand
    return _round_up(bb, 16)


def dqn_kernel(x_ref, w1_ref, b1_ref, w2_ref, b2_ref, w3_ref, b3_ref, o_ref,
               *, compute_dtype, ew_dtype):
    # x is streamed from HBM as f32 and cast to the MXU operand dtype here,
    # inside the kernel (no wrapper-side cast pass over all of x).
    x = x_ref[...].astype(compute_dtype)
    # Layer 1: (bb, F) @ (F, H1), f32 accumulation on the MXU.
    h1 = jnp.dot(x, w1_ref[...], preferred_element_type=jnp.float32)
    h1 = jnp.maximum(h1.astype(ew_dtype) + b1_ref[...], 0.0).astype(compute_dtype)
    # Layer 2: (bb, H1) @ (H1, H2).
    h2 = jnp.dot(h1, w2_ref[...], preferred_element_type=jnp.float32)
    h2 = jnp.maximum(h2.astype(ew_dtype) + b2_ref[...], 0.0).astype(compute_dtype)
    # Output layer: (bb, H2) @ (H2, A_pad). A_pad is lane-dense (multiple of
    # 128) so the store is an unmasked vst; stored in compute_dtype (bf16 by
    # default) to halve output-writeback HBM bytes.
    out = jnp.dot(h2, w3_ref[...], preferred_element_type=jnp.float32)
    o_ref[...] = (out.astype(ew_dtype) + b3_ref[...]).astype(o_ref.dtype)


@functools.partial(jax.jit,
                   static_argnames=("block_b", "compute_dtype", "ew_dtype"))
def dqn_forward(x, w1, b1, w2, b2, w3, b3, *, block_b=2048,
                compute_dtype=jnp.bfloat16, ew_dtype=None):
    B, F = x.shape
    H1 = w1.shape[1]
    H2 = w2.shape[1]
    A = w3.shape[1]

    if ew_dtype is None:
        ew_dtype = _elementwise_dtype_for_backend()

    # Lane-dense output: pad the action dim to a full 128-lane group so the
    # output tile store is an unmasked vst instead of masked vst.msk.
    A_pad = _round_up(A, _LANE)
    if A_pad != A:
        w3 = jnp.pad(w3, ((0, 0), (0, A_pad - A)))
        b3 = jnp.pad(b3, ((0, 0), (0, A_pad - A)))

    # Balanced batch tiling; only a small remainder (if any) is padded.
    bb = _choose_block_b(B, block_b)
    B_pad = _round_up(B, bb)
    if B_pad != B:
        # Padded rows produce ReLU(bias)-derived garbage in the padded output
        # region; they are sliced off below and never leak into the result.
        x = jnp.pad(x, ((0, B_pad - B), (0, 0)))

    # x stays f32 (cast happens in-kernel); only the tiny resident weights and
    # biases are pre-cast here.
    w1 = w1.astype(compute_dtype)
    w2 = w2.astype(compute_dtype)
    w3 = w3.astype(compute_dtype)
    b1 = b1.astype(ew_dtype)
    b2 = b2.astype(ew_dtype)
    b3 = b3.astype(ew_dtype)

    grid = (B_pad // bb,)

    # VMEM budget (why tiles are NOT shrunk, even for v7x's 64 MiB VMEM):
    #   resident weights + biases (bf16):   ~28 KiB
    #   x tile f32, double-buffered:        2 * bb*F*4     (= 512 KiB @ bb=2048)
    #   out tile bf16, double-buffered:     2 * bb*128*2   (=   1 MiB @ bb=2048)
    #   f32 intermediates:                  ~bb*(H1+H2+128)*4 (~2 MiB @ bb=2048)
    # Total < 4 MiB at bb=2048 -> far below every generation's scoped default.

    w_isz = jnp.dtype(compute_dtype).itemsize
    flops = 2 * B_pad * (F * H1 + H1 * H2 + H2 * A_pad)
    bytes_accessed = (
        B_pad * F * x.dtype.itemsize                         # x (f32, read once)
        + (F * H1 + H1 * H2 + H2 * A_pad) * w_isz            # weights (resident)
        + (H1 + H2 + A_pad) * jnp.dtype(ew_dtype).itemsize   # biases
        + B_pad * A_pad * jnp.dtype(compute_dtype).itemsize  # output (bf16)
    )

    kernel = functools.partial(dqn_kernel, compute_dtype=compute_dtype,
                               ew_dtype=ew_dtype)

    out = pl.pallas_call(
        kernel,
        out_shape=jax.ShapeDtypeStruct((B_pad, A_pad), compute_dtype),
        grid_spec=pltpu.PrefetchScalarGridSpec(
            num_scalar_prefetch=0,
            grid=grid,
            in_specs=[
                pl.BlockSpec((bb, F), lambda i: (i, 0)),      # x tile (streamed)
                pl.BlockSpec((F, H1), lambda i: (0, 0)),      # W1 (resident)
                pl.BlockSpec((1, H1), lambda i: (0, 0)),      # b1
                pl.BlockSpec((H1, H2), lambda i: (0, 0)),     # W2 (resident)
                pl.BlockSpec((1, H2), lambda i: (0, 0)),      # b2
                pl.BlockSpec((H2, A_pad), lambda i: (0, 0)),  # W3 (resident, lane-padded)
                pl.BlockSpec((1, A_pad), lambda i: (0, 0)),   # b3 (lane-padded)
            ],
            out_specs=pl.BlockSpec((bb, A_pad), lambda i: (i, 0)),
        ),
        compiler_params=pltpu.CompilerParams(
            # Independent batch tiles -> shardable across v7x's 2 TensorCores.
            dimension_semantics=("parallel",),
        ),
        cost_estimate=pl.CostEstimate(
            flops=flops, transcendentals=0, bytes_accessed=bytes_accessed),
    )(x, w1, b1, w2, b2, w3, b3)

    # NOTE: this slice + f32 cast is a separate (small) XLA copy over the
    # padded bf16 buffer; callers that can consume the padded bf16 output
    # directly (e.g. an argmax over actions) should take the kernel output
    # as-is to avoid the extra HBM round-trip.
    return out[:B, :A].astype(jnp.float32)


def dqn_reference(x, w1, b1, w2, b2, w3, b3, *, compute_dtype=jnp.float32,
                  ew_dtype=jnp.float32, out_dtype=jnp.float32):
    """Pure-JAX reference; dtype args mirror the kernel's compute path."""
    cd, ed = compute_dtype, ew_dtype
    h1 = jnp.dot(x.astype(cd), w1.astype(cd), preferred_element_type=jnp.float32)
    h1 = jnp.maximum(h1.astype(ed) + b1.astype(ed), 0.0).astype(cd)
    h2 = jnp.dot(h1, w2.astype(cd), preferred_element_type=jnp.float32)
    h2 = jnp.maximum(h2.astype(ed) + b2.astype(ed), 0.0).astype(cd)
    out = jnp.dot(h2, w3.astype(cd), preferred_element_type=jnp.float32)
    return (out.astype(ed) + b3.astype(ed)).astype(out_dtype)


if __name__ == "__main__":
    # Small, deterministic config (stand-in for Config()):
    num_features = 32     # input width
    n_hidden1 = 64        # config.n_hidden1
    n_hidden2 = 64        # config.n_hidden2
    num_actions = 8
    batch = 16

    key = jax.random.PRNGKey(0)
    kx, k1, k2, k3, kb1, kb2, kb3 = jax.random.split(key, 7)

    x = jax.random.normal(kx, (batch, num_features), dtype=jnp.float32)

    # Deterministic parameter init (mirrors normal_(0, 0.1) in DQN.init).
    # Stored as (in_dim, out_dim) == PyTorch weight.T
    w1 = 0.1 * jax.random.normal(k1, (num_features, n_hidden1), dtype=jnp.float32)
    w2 = 0.1 * jax.random.normal(k2, (n_hidden1, n_hidden2), dtype=jnp.float32)
    w3 = 0.1 * jax.random.normal(k3, (n_hidden2, num_actions), dtype=jnp.float32)
    b1 = 0.01 * jax.random.normal(kb1, (1, n_hidden1), dtype=jnp.float32)
    b2 = 0.01 * jax.random.normal(kb2, (1, n_hidden2), dtype=jnp.float32)
    b3 = 0.01 * jax.random.normal(kb3, (1, num_actions), dtype=jnp.float32)

    ew_dtype = _elementwise_dtype_for_backend()

    out = dqn_forward(x, w1, b1, w2, b2, w3, b3, ew_dtype=ew_dtype)
    out = jax.block_until_ready(out)
    assert out.shape == (batch, num_actions)
    assert out.dtype == jnp.float32

    # Tight check vs a reference mirroring the kernel's exact dtype path
    # (bf16 MXU operands, f32 accumulation, generation-dependent elementwise
    # dtype, bf16 store), and a looser sanity check vs full-f32 semantics.
    ref_mirror = dqn_reference(
        x, w1, b1, w2, b2, w3, b3, compute_dtype=jnp.bfloat16,
        ew_dtype=ew_dtype, out_dtype=jnp.bfloat16).astype(jnp.float32)
    ref_f32 = dqn_reference(x, w1, b1, w2, b2, w3, b3)
    assert jnp.allclose(out, ref_mirror, atol=2e-3, rtol=1e-2), \
        "mismatch vs dtype-mirrored reference"
    assert jnp.allclose(out, ref_f32, atol=5e-2, rtol=5e-2), \
        "mismatch vs f32 reference"

    print("KERNEL_OK")
</pallas_src>

<mosaic_0001>
module attributes {stable_mosaic.version = 11 : i64} {
  func.func @dqn_kernel(%arg0: i32, %arg1: memref<16x32xf32, #tpu.memory_space<vmem>>, %arg2: memref<32x64xbf16, #tpu.memory_space<vmem>>, %arg3: memref<1x64xf32, #tpu.memory_space<vmem>>, %arg4: memref<64x64xbf16, #tpu.memory_space<vmem>>, %arg5: memref<1x64xf32, #tpu.memory_space<vmem>>, %arg6: memref<64x128xbf16, #tpu.memory_space<vmem>>, %arg7: memref<1x128xf32, #tpu.memory_space<vmem>>, %arg8: memref<16x128xbf16, #tpu.memory_space<vmem>>) attributes {dimension_semantics = [#tpu.dimension_semantics<parallel>], iteration_bounds = array<i64: 1>, scalar_prefetch = 0 : i64, scratch_operands = 0 : i64, tpu.core_type = #tpu.core_type<tc>, window_params = [{transform_indices = @transform_0, window_bounds = array<i64: 16, 32>}, {pipeline_mode = #tpu.pipeline_mode<synchronous>, transform_indices = @transform_1, window_bounds = array<i64: 32, 64>}, {pipeline_mode = #tpu.pipeline_mode<synchronous>, transform_indices = @transform_2, window_bounds = array<i64: 1, 64>}, {pipeline_mode = #tpu.pipeline_mode<synchronous>, transform_indices = @transform_3, window_bounds = array<i64: 64, 64>}, {pipeline_mode = #tpu.pipeline_mode<synchronous>, transform_indices = @transform_4, window_bounds = array<i64: 1, 64>}, {pipeline_mode = #tpu.pipeline_mode<synchronous>, transform_indices = @transform_5, window_bounds = array<i64: 64, 128>}, {pipeline_mode = #tpu.pipeline_mode<synchronous>, transform_indices = @transform_6, window_bounds = array<i64: 1, 128>}, {transform_indices = @transform_7, window_bounds = array<i64: 16, 128>}]} {
    %c0 = arith.constant 0 : index
    %c0_0 = arith.constant 0 : index
    %0 = vector.load %arg1[%c0, %c0_0] : memref<16x32xf32, #tpu.memory_space<vmem>>, vector<16x32xf32>
    %1 = arith.truncf %0 : vector<16x32xf32> to vector<16x32xbf16>
    %c0_1 = arith.constant 0 : index
    %c0_2 = arith.constant 0 : index
    %2 = vector.load %arg2[%c0_1, %c0_2] : memref<32x64xbf16, #tpu.memory_space<vmem>>, vector<32x64xbf16>
    %cst = arith.constant dense<0.000000e+00> : vector<16x64xf32>
    %3 = tpu.matmul %1, %2, %cst {dimension_numbers = #tpu.dot_dimension_numbers<[1], [0], [0], [1], [0, 0, 1, 1], [], []>} : vector<16x32xbf16>, vector<32x64xbf16>, vector<16x64xf32> -> vector<16x64xf32>
    %c0_3 = arith.constant 0 : index
    %c0_4 = arith.constant 0 : index
    %4 = vector.load %arg3[%c0_3, %c0_4] : memref<1x64xf32, #tpu.memory_space<vmem>>, vector<1x64xf32>
    %5 = vector.broadcast %4 : vector<1x64xf32> to vector<16x64xf32>
    %6 = arith.addf %3, %5 : vector<16x64xf32>
    %cst_5 = arith.constant 0.000000e+00 : f32
    %7 = vector.broadcast %cst_5 : f32 to vector<16x64xf32>
    %8 = arith.maximumf %6, %7 : vector<16x64xf32>
    %9 = arith.truncf %8 : vector<16x64xf32> to vector<16x64xbf16>
    %c0_6 = arith.constant 0 : index
    %c0_7 = arith.constant 0 : index
    %10 = vector.load %arg4[%c0_6, %c0_7] : memref<64x64xbf16, #tpu.memory_space<vmem>>, vector<64x64xbf16>
    %cst_8 = arith.constant dense<0.000000e+00> : vector<16x64xf32>
    %11 = tpu.matmul %9, %10, %cst_8 {dimension_numbers = #tpu.dot_dimension_numbers<[1], [0], [0], [1], [0, 0, 1, 1], [], []>} : vector<16x64xbf16>, vector<64x64xbf16>, vector<16x64xf32> -> vector<16x64xf32>
    %c0_9 = arith.constant 0 : index
    %c0_10 = arith.constant 0 : index
    %12 = vector.load %arg5[%c0_9, %c0_10] : memref<1x64xf32, #tpu.memory_space<vmem>>, vector<1x64xf32>
    %13 = vector.broadcast %12 : vector<1x64xf32> to vector<16x64xf32>
    %14 = arith.addf %11, %13 : vector<16x64xf32>
    %cst_11 = arith.constant 0.000000e+00 : f32
    %15 = vector.broadcast %cst_11 : f32 to vector<16x64xf32>
    %16 = arith.maximumf %14, %15 : vector<16x64xf32>
    %17 = arith.truncf %16 : vector<16x64xf32> to vector<16x64xbf16>
    %c0_12 = arith.constant 0 : index
    %c0_13 = arith.constant 0 : index
    %18 = vector.load %arg6[%c0_12, %c0_13] : memref<64x128xbf16, #tpu.memory_space<vmem>>, vector<64x128xbf16>
    %cst_14 = arith.constant dense<0.000000e+00> : vector<16x128xf32>
    %19 = tpu.matmul %17, %18, %cst_14 {dimension_numbers = #tpu.dot_dimension_numbers<[1], [0], [0], [1], [0, 0, 1, 1], [], []>} : vector<16x64xbf16>, vector<64x128xbf16>, vector<16x128xf32> -> vector<16x128xf32>
    %c0_15 = arith.constant 0 : index
    %c0_16 = arith.constant 0 : index
    %20 = vector.load %arg7[%c0_15, %c0_16] : memref<1x128xf32, #tpu.memory_space<vmem>>, vector<1x128xf32>
    %21 = vector.broadcast %20 : vector<1x128xf32> to vector<16x128xf32>
    %22 = arith.addf %19, %21 : vector<16x128xf32>
    %23 = arith.truncf %22 : vector<16x128xf32> to vector<16x128xbf16>
    %c0_17 = arith.constant 0 : index
    %c0_18 = arith.constant 0 : index
    %24 = vector.load %arg8[%c0_17, %c0_18] : memref<16x128xbf16, #tpu.memory_space<vmem>>, vector<16x128xbf16>
    tpu.vector_store %arg8[%c0_17, %c0_18], %23 {strides = array<i32>} : memref<16x128xbf16, #tpu.memory_space<vmem>>, vector<16x128xbf16>,
    return
  }
  func.func @transform_0(%arg0: i32) -> (i32, i32) {
    %c0_i32 = arith.constant 0 : i32
    %c0_i32_0 = arith.constant 0 : i32
    return %arg0, %c0_i32 : i32, i32
  }
  func.func @transform_1(%arg0: i32) -> (i32, i32) {
    %c0_i32 = arith.constant 0 : i32
    %c0_i32_0 = arith.constant 0 : i32
    %c0_i32_1 = arith.constant 0 : i32
    return %c0_i32, %c0_i32_0 : i32, i32
  }
  func.func @transform_2(%arg0: i32) -> (i32, i32) {
    %c0_i32 = arith.constant 0 : i32
    %c0_i32_0 = arith.constant 0 : i32
    %c0_i32_1 = arith.constant 0 : i32
    return %c0_i32, %c0_i32_0 : i32, i32
  }
  func.func @transform_3(%arg0: i32) -> (i32, i32) {
    %c0_i32 = arith.constant 0 : i32
    %c0_i32_0 = arith.constant 0 : i32
    %c0_i32_1 = arith.constant 0 : i32
    return %c0_i32, %c0_i32_0 : i32, i32
  }
  func.func @transform_4(%arg0: i32) -> (i32, i32) {
    %c0_i32 = arith.constant 0 : i32
    %c0_i32_0 = arith.constant 0 : i32
    %c0_i32_1 = arith.constant 0 : i32
    return %c0_i32, %c0_i32_0 : i32, i32
  }
  func.func @transform_5(%arg0: i32) -> (i32, i32) {
    %c0_i32 = arith.constant 0 : i32
    %c0_i32_0 = arith.constant 0 : i32
    %c0_i32_1 = arith.constant 0 : i32
    return %c0_i32, %c0_i32_0 : i32, i32
  }
  func.func @transform_6(%arg0: i32) -> (i32, i32) {
    %c0_i32 = arith.constant 0 : i32
    %c0_i32_0 = arith.constant 0 : i32
    %c0_i32_1 = arith.constant 0 : i32
    return %c0_i32, %c0_i32_0 : i32, i32
  }
  func.func @transform_7(%arg0: i32) -> (i32, i32) {
    %c0_i32 = arith.constant 0 : i32
    %c0_i32_0 = arith.constant 0 : i32
    return %arg0, %c0_i32 : i32, i32
  }
}

</mosaic_0001>

<bundles_post_ra>
// kernel: dqn_forward.1
= control target key start
LH: loop header
LB: loop body
LE: loop exit
PB: predicated region body
PF: predicated region fallthrough
CT: control target
= control target key end

     0   :  { %v367_v0 = vmov 0.0   ;;  %vm368_vm0 = vmmov 0   ;;  %vm53_vm1 = vcmask 261120   ;;  %vm140_vm2 = vcmask 523264   ;;  %s462_s1 = inlined_call_operand.vmem [shape: bf16[32,64], index: 1, kind: input, shape index: {}]   ;;  %s463_s0 = inlined_call_operand.vmem [shape: f32[16,32], index: 0, kind: input, shape index: {}]   ;;  %s464_s3 = inlined_call_operand.vmem [shape: bf16[64,64], index: 3, kind: input, shape index: {}]   ;;  %s465_s5 = inlined_call_operand.vmem [shape: bf16[64,128], index: 5, kind: input, shape index: {}]   ;;  %s466_s2 = inlined_call_operand.vmem [shape: f32[1,64], index: 2, kind: input, shape index: {}]   ;;  %s467_s4 = inlined_call_operand.vmem [shape: f32[1,64], index: 4, kind: input, shape index: {}]   ;;  %s468_s6 = inlined_call_operand.vmem [shape: f32[1,128], index: 6, kind: input, shape index: {}]   ;;  %s469_s7 = inlined_call_operand.vmem [shape: bf16[16,128], index: 7, kind: output, shape index: {}]  }
   0x1   :  { %323 = vmatprep.subr.bf16.mxu0 %v367_v0  ;;  %v357_v1 = vld [vmem:[%s462_s1] sm:$0xff]   ;;  %327 = vmatprep.mubr.msk.bf16.mxu0 %vm368_vm0, %v367_v0  ;;  %v358_v2 = vld [vmem:[%s462_s1 + $0x8] sm:$0xff]   ;;  %v361_v8 = vld [vmem:[%s464_s3 + $0x10] sm:$0xff]  }
   0x2   :  { %331 = vmatprep.subr.bf16.mxu1 %v367_v0  ;;  %339 = vmatprep.mubr.msk.bf16.mxu1 %vm368_vm0, %v367_v0  ;;  %v27_v3 = vld [vmem:[%s463_s0] sm:$0xff]  ;;  %v28_v4 = vld [vmem:[%s463_s0 + $0x8] sm:$0xff]  ;;  %v362_v9 = vld [vmem:[%s464_s3 + $0x18] sm:$0xff]  }
   0x3   :  { %324 = vmatpush3.bf16.msra.mxu0 %v357_v1  ;;  %v359_v5 = vld [vmem:[%s464_s3] sm:$0xff]   ;;  %v360_v6 = vld [vmem:[%s464_s3 + $0x8] sm:$0xff]   ;;  %v29_v7 = vpack.c.bf16 %v28_v4, %v27_v3  ;;  %v365_v22 = vld [vmem:[%s465_s5 + $0x10] sm:$0xff]  }
   0x4   :  { %325 = vmatprep.subr.bf16.mxu0 %v367_v0  ;;  %332 = vmatpush3.bf16.msra.mxu1 %v359_v5  ;;  %v363_v10 = vld [vmem:[%s465_s5] sm:$0xff]   ;;  %v364_v11 = vld [vmem:[%s465_s5 + $0x8] sm:$0xff]   ;;  %v366_v23 = vld [vmem:[%s465_s5 + $0x18] sm:$0xff]  }
   0x5   :  { %333 = vmatprep.subr.bf16.mxu1 %v367_v0  ;;  %v285_v12 = vld [vmem:[%s466_s2] ss:$0 sm:$0xff] }
   0x6   :  { %v289_v24 = vld [vmem:[%s467_s4] ss:$0 sm:$0xff] }
   0x7   :  { %326 = vmatpush3.bf16.msra.mxu0 %v358_v2  ;;  %v295_v34 = vld [vmem:[%s468_s6] ss:$0 sm:$0xff] }
   0x8   :  { %343 = vmatprep.subr.bf16.mxu0 %v367_v0  ;;  %334 = vmatpush3.bf16.msra.mxu1 %v360_v6 }
   0x9   :  { %335 = vmatprep.subr.bf16.mxu1 %v367_v0 }
   0xa   :  { %328 = vmatmul.mubr.msk.bf16.vlgmr.msra.gmra.mrb[0].mxu0 %vm53_vm1, %v29_v7 }
   0xb   :  { %351 = vmatprep.mubr.msk.bf16.mxu0 %vm368_vm0, %v367_v0  ;;  %344 = vmatpush3.bf16.msra.mxu0 %v363_v10 }
   0xc   :  { %336 = vmatpush3.bf16.msra.mxu1 %v361_v8  ;;  %345 = vmatprep.subr.bf16.mxu0 %v367_v0 }
   0xd   :  { %337 = vmatprep.subr.bf16.mxu1 %v367_v0 }
   0xf   :  { %346 = vmatpush3.bf16.msra.mxu0 %v364_v11 }
  0x10   :  { %338 = vmatpush3.bf16.msra.mxu1 %v362_v9  ;;  %347 = vmatprep.subr.bf16.mxu0 %v367_v0 }
  0x13   :  { %348 = vmatpush3.bf16.msra.mxu0 %v365_v22 }
  0x14   :  { %349 = vmatprep.subr.bf16.mxu0 %v367_v0 }
  0x17   :  { %350 = vmatpush3.bf16.msra.mxu0 %v366_v23 }
  0xdd   :  { %v91_v13 = vpop.f32.mrb[0].mxu0 }
  0xde   :  { %v92_v14 = vadd.f32 %v285_v12, %v91_v13  ;;  %v329_v15 = vpop.f32.mrb[1].mxu0 }
  0xdf   :  { %v94_v16 = vpop.f32.mrb[2].mxu0 }
  0xe0   :  { %v95_v17 = vadd.f32 %v285_v12, %v94_v16  ;;  %v330_v18 = vpop.f32.mrb[3].mxu0  ;;  %v98_v19 = vmax.f32 %v92_v14, 0.0 }
  0xe2   :  { %v99_v20 = vmax.f32 %v95_v17, 0.0 }
  0xe4   :  { %v100_v21 = vpack.c.bf16 %v99_v20, %v98_v19 }
  0xe6   :  { %340 = vmatmul.mubr.msk.bf16.vlgmr.msra.gmra.mrb[0].mxu1 %vm140_vm2, %v100_v21 }
 0x1b9   :  { %v178_v25 = vpop.f32.mrb[0].mxu1 }
 0x1ba   :  { %v179_v26 = vadd.f32 %v289_v24, %v178_v25  ;;  %v341_v27 = vpop.f32.mrb[1].mxu1 }
 0x1bb   :  { %v181_v28 = vpop.f32.mrb[2].mxu1 }
 0x1bc   :  { %v182_v29 = vadd.f32 %v289_v24, %v181_v28  ;;  %v342_v30 = vpop.f32.mrb[3].mxu1  ;;  %v185_v31 = vmax.f32 %v179_v26, 0.0 }
 0x1be   :  { %v186_v32 = vmax.f32 %v182_v29, 0.0 }
 0x1c0   :  { %v187_v33 = vpack.c.bf16 %v186_v32, %v185_v31 }
 0x1c2   :  { %352 = vmatmul.mubr.msk.bf16.vlgmr.msra.gmra.mrb[4].mxu0 %vm140_vm2, %v187_v33 }
 0x295   :  { %v264_v35 = vpop.f32.mrb[4].mxu0 }
 0x296   :  { %v353_v36 = vpop.f32.mrb[5].mxu0  ;;  %v265_v38 = vadd.f32 %v295_v34, %v264_v35 }
 0x297   :  { %v267_v37 = vpop.f32.mrb[6].mxu0 }
 0x298   :  { %v268_v39 = vadd.f32 %v295_v34, %v267_v37  ;;  %v354_v40 = vpop.f32.mrb[7].mxu0 }
 0x29a   :  { %v308_v41 = vpack.c.bf16 %v268_v39, %v265_v38 }
 0x29c   :  { %309 = vst [vmem:[%s469_s7] sm:$0xff] %v308_v41  }

</bundles_post_ra>
